<compile_context>
chip_gen: v7x
topology: tpu7x:2x2x1
jax: 0.10.0
libtpu: 0.0.40
codegen_flags: <defaults>
</compile_context>

<pallas_src>
import functools
import types

import jax
import jax.numpy as jnp
from jax import lax
from jax.experimental import pallas as pl
from jax.experimental.pallas import tpu as pltpu

LANE = 128
ALIGN = 16                              # bf16 native tile height (16, 128)
MAX_M_CHUNK = 256                       # flat output rows per grid program (cap)
MAX_VMEM_LIMIT = 56 * 1024 * 1024       # stay under v7x's 64 MiB physical VMEM
MIN_VMEM_LIMIT = 40 * 1024 * 1024


def _rup(x, m):
    return ((x + m - 1) // m) * m


@functools.lru_cache(maxsize=None)
def _use_k256():
    """True on chips with a 256-deep MXU (v6e / v7x); False on v2..v5."""
    try:
        kind = jax.devices()[0].device_kind.lower()
    except Exception:                    # be permissive if the query fails
        return True
    return not any(v in kind for v in ("v2", "v3", "v4", "v5"))


# ----------------------------------------------------------------------------
# Implicit-GEMM conv kernel (stride-1 conv, NHWC, channels padded to 128).
# ----------------------------------------------------------------------------
def _conv_tap_kernel(x_ref, w_ref, b_ref, o_ref, *, k, wl, cin_p, ch, chw,
                     relu, pair):
    """Computes one chunk of `ch` flat output rows for one batch element.

    x_ref: (1, rows_alloc, cin_p)  bf16  flat padded input slab (row stride wl)
    w_ref: (k*k*cin_p, cout_p)     bf16  tap-major GEMM weight, (dx, dy, ci) order
    b_ref: (1, cout_p)             f32
    o_ref: (1, ch, cout_p)         f32
    """
    cout_p = o_ref.shape[2]
    r0 = pl.program_id(1) * ch                        # chunk start (mult of ALIGN)
    acc = jnp.broadcast_to(b_ref[...], (ch, cout_p))  # f32; bias folded into init

    def load_rows(dy):
        # dynamic but provably 16-aligned row offset -> aligned bf16 tile load
        base = pl.multiple_of(r0 + dy * wl, ALIGN)
        return x_ref[0, pl.ds(base, chw), :]          # (chw, cin_p) bf16

    dy = 0
    while dy < k:                                     # static unroll (k <= 11)
        if pair and dy + 1 < k:
            # K=256 tap-pair fusion: taps dy and dy+1 in one MXU pass.
            xs = jnp.concatenate([load_rows(dy), load_rows(dy + 1)], axis=1)
            taps = 2
        else:
            xs = load_rows(dy)
            taps = 1
        for dx in range(k):                           # static unroll
            w0 = (dx * k + dy) * cin_p                # static weight row offset
            ws = w_ref[w0:w0 + taps * cin_p, :]       # (taps*cin_p, cout_p) bf16
            y = jnp.dot(xs, ws, preferred_element_type=jnp.float32)
            # horizontal tap shift applied on the f32 result: keeps every bf16
            # access tile-aligned (no packed re-slicing, no in-kernel casts).
            acc = acc + y[dx:dx + ch, :]
        dy += taps

    if relu:
        acc = jnp.maximum(acc, 0.0)
    o_ref[0] = acc                                    # single store of the block


def _extract_patches(x, k, pad):
    """NHWC -> (N, Ho, Wo, k*k*C) im2col patches, channel order (dy, dx, c)."""
    n, h, w, c = x.shape
    xp = jnp.pad(x, ((0, 0), (pad, pad), (pad, pad), (0, 0)))
    ho, wo = h + 2 * pad - k + 1, w + 2 * pad - k + 1
    slices = [xp[:, dy:dy + ho, dx:dx + wo, :]
              for dy in range(k) for dx in range(k)]
    return jnp.concatenate(slices, axis=-1)


@functools.lru_cache(maxsize=None)
def _build_conv(N, H, W, Cin, cin_p, cout, cout_p, k, pad, relu, im2col):
    """Builds (once per shape signature) a jitted conv:  x NHWC f32 -> NHWC f32."""
    if im2col:
        # tiny-Cin conv: explicit im2col in the wrapper, then a 1x1 GEMM conv.
        Hg, Wg = H + 2 * pad - k + 1, W + 2 * pad - k + 1
        Cg, kk, pp = Cin * k * k, 1, 0
    else:
        Hg, Wg, Cg, kk, pp = H, W, Cin, k, pad

    Hp, Wp = Hg + 2 * pp, Wg + 2 * pp
    Ho, Wo = Hp - kk + 1, Wp - kk + 1
    Wl = _rup(Wp, ALIGN)                   # layout row stride (16-aligned)
    m_rows = Ho * Wl                       # width-padded flat output rows / image
    ch = m_rows if m_rows <= 2 * MAX_M_CHUNK else MAX_M_CHUNK
    mt = pl.cdiv(m_rows, ch)
    chw = _rup(ch + kk - 1, ALIGN)         # input rows read per (chunk, dy)
    rows_alloc = _rup(max(Hp * Wl, (mt - 1) * ch + (kk - 1) * Wl + chw), ALIGN)

    pair = bool(_use_k256()) and kk > 1
    kernel = functools.partial(_conv_tap_kernel, k=kk, wl=Wl, cin_p=cin_p,
                               ch=ch, chw=chw, relu=relu, pair=pair)

    # Per-layer VMEM budget from the actual block sizes (+ headroom for compute
    # temporaries / compiler scratch), capped under v7x's physical VMEM.
    est = 2 * rows_alloc * cin_p * 2               # bf16 slab (double-buffered)
    est += 2 * kk * kk * cin_p * cout_p * 2        # bf16 weights (double-buffered)
    est += 2 * cout_p * 4                          # bias
    est += 2 * ch * cout_p * 4                     # f32 output block
    est += (ch + 2 * chw) * cout_p * 4 + 4 * chw * cin_p * 2   # acc / y / xs temps
    vmem_limit = int(min(MAX_VMEM_LIMIT,
                         max(MIN_VMEM_LIMIT, est + 16 * 1024 * 1024)))

    conv_call = pl.pallas_call(
        kernel,
        out_shape=jax.ShapeDtypeStruct((N, mt * ch, cout_p), jnp.float32),
        grid_spec=pltpu.PrefetchScalarGridSpec(
            num_scalar_prefetch=0,
            grid=(N, mt),
            in_specs=[
                pl.BlockSpec((1, rows_alloc, cin_p), lambda n, m: (n, 0, 0)),
                # TODO(synk): single-buffer these grid-invariant operands via
                # pipeline_mode once VMEM headroom becomes load-bearing.
                pl.BlockSpec((kk * kk * cin_p, cout_p), lambda n, m: (0, 0)),
                pl.BlockSpec((1, cout_p), lambda n, m: (0, 0)),
            ],
            out_specs=pl.BlockSpec((1, ch, cout_p), lambda n, m: (n, m, 0)),
        ),
        compiler_params=pltpu.CompilerParams(
            dimension_semantics=("parallel", "parallel"),
            vmem_limit_bytes=vmem_limit),
    )

    def fn(x, w2, b2):
        # MXU operands are bf16 anyway; storing the slab as bf16 halves VMEM
        # residency and HBM->VMEM DMA (perf feedback #1).
        xb = x.astype(jnp.bfloat16)
        if im2col:
            xb = _extract_patches(xb, k, pad)      # (N, Hg, Wg, k*k*Cin)
        # pad spatially (+ extra width so the row stride is 16-aligned) and on
        # channels (to cin_p); flatten spatial dims; pad the tail so every
        # shifted-window read stays in bounds.
        xp = jnp.pad(xb, ((0, 0), (pp, pp), (pp, pp + Wl - Wp), (0, cin_p - Cg)))
        xf = xp.reshape(N, Hp * Wl, cin_p)
        xf = jnp.pad(xf, ((0, 0), (0, rows_alloc - Hp * Wl), (0, 0)))
        out = conv_call(xf, w2, b2)
        out = out[:, :m_rows, :].reshape(N, Ho, Wl, cout_p)
        return out[:, :, :Wo, :cout]               # drop width-pad + channel pad

    return jax.jit(fn)


def conv2d(x, layer):
    """x: NHWC f32; layer: dict built by _make_conv_params (GEMM-ready)."""
    N, H, W, Cin = x.shape
    assert Cin == layer["cin"]
    fn = _build_conv(N, H, W, Cin, layer["cin_p"], layer["cout"], layer["cout_p"],
                     layer["k"], layer["pad"], layer["relu"], layer["im2col"])
    return fn(x, layer["w2"], layer["b2"])


def maxpool3x3s2p1(x):  # NHWC, matches nn.MaxPool2d(3, 2, padding=1)
    return lax.reduce_window(x, -jnp.inf, lax.max,
                             window_dimensions=(1, 3, 3, 1),
                             window_strides=(1, 2, 2, 1),
                             padding=((0, 0), (1, 1), (1, 1), (0, 0)))


# ----------------------------------------------------------------------------
# find_tensor_peak_batch (soft-argmax over a window around the peak).
# grid_sample at integer coordinates (align_corners=True) == masked gather;
# out-of-bounds samples become 0 and are then thresholded to eps, matching the
# original SBR helper; the *downsample + downsample/2 - 0.5 offset also matches.
# ----------------------------------------------------------------------------
def find_tensor_peak_batch(heatmap, radius, downsample, threshold=1e-6):
    """heatmap: (P, H, W) f32 -> (locs (P,2), scores (P,))."""
    P, H, W = heatmap.shape
    flat = heatmap.reshape(P, -1)
    score = flat.max(axis=1)
    index = flat.argmax(axis=1)
    iw = (index % W).astype(jnp.int32)
    ih = (index // W).astype(jnp.int32)

    offs = jnp.arange(-radius, radius + 1, dtype=jnp.int32)
    sy = ih[:, None, None] + offs[None, :, None]
    sx = iw[:, None, None] + offs[None, None, :]
    valid = (sy >= 0) & (sy < H) & (sx >= 0) & (sx < W)
    syc = jnp.clip(sy, 0, H - 1)
    sxc = jnp.clip(sx, 0, W - 1)
    sub = heatmap[jnp.arange(P)[:, None, None], syc, sxc]
    sub = jnp.where(valid, sub, 0.0)
    eps = 2.220446049250313e-16  # np.finfo(float).eps
    sub = jnp.where(sub > threshold, sub, eps)

    X = offs.astype(jnp.float32)[None, None, :]
    Y = offs.astype(jnp.float32)[None, :, None]
    sum_region = jnp.sum(sub.reshape(P, -1), axis=1)
    x = jnp.sum((sub * X).reshape(P, -1), axis=1) / sum_region + iw.astype(jnp.float32)
    y = jnp.sum((sub * Y).reshape(P, -1), axis=1) / sum_region + ih.astype(jnp.float32)
    x = x * downsample + downsample / 2.0 - 0.5
    y = y * downsample + downsample / 2.0 - 0.5
    return jnp.stack([x, y], axis=1), score


# ----------------------------------------------------------------------------
# CPM_ori model
# ----------------------------------------------------------------------------
def _make_conv_params(key, specs, std=0.01):
    """specs: list of (Cout, Cin, k, pad, relu).  GEMM-ready weights built once."""
    params = []
    for (cout, cin, k, pad, relu) in specs:
        key, sub = jax.random.split(key)
        w = jax.random.normal(sub, (cout, cin, k, k), jnp.float32) * std
        b = jnp.zeros((cout,), jnp.float32)
        cout_p = _rup(cout, LANE)
        im2col = cin <= 8 and k > 1          # tiny-Cin conv -> explicit im2col GEMM
        if im2col:
            cin_g = k * k * cin              # patch features, order (dy, dx, ci)
            cin_p = _rup(cin_g, LANE)
            w_t = jnp.transpose(w, (2, 3, 1, 0)).reshape(cin_g, cout)
            w2 = jnp.pad(w_t, ((0, cin_p - cin_g), (0, cout_p - cout)))
        else:
            cin_p = _rup(cin, LANE)
            # (Cout,Cin,kh,kw) -> (kw,kh,Cin_p,Cout_p): (dx, dy, ci) tap order so
            # vertically adjacent taps (dy, dy+1) occupy contiguous K rows, which
            # the kernel's K=256 tap-pair fusion relies on.
            w_t = jnp.transpose(w, (3, 2, 1, 0))
            w_t = jnp.pad(w_t, ((0, 0), (0, 0), (0, cin_p - cin), (0, cout_p - cout)))
            w2 = w_t.reshape(k * k * cin_p, cout_p)
        w2 = w2.astype(jnp.bfloat16)
        b2 = jnp.pad(b, (0, cout_p - cout)).reshape(1, cout_p)
        params.append(dict(w2=w2, b2=b2, k=k, pad=pad, relu=relu, im2col=im2col,
                           cin=cin, cout=cout, cin_p=cin_p, cout_p=cout_p))
    return key, params


class CPM_ori_Pallas:
    def __init__(self, config, pts_num, key):
        self.config = config
        self.downsample = 8
        self.pts_num = pts_num

        backbone = [
            (128, 3, 9, 4, True),
            (128, 128, 9, 4, True),
            (128, 128, 9, 4, True),
            (32, 128, 5, 2, True),
        ]
        stage1_tail = [
            (512, 32, 9, 4, True),
            (512, 512, 1, 0, True),
            (pts_num, 512, 1, 0, False),
        ]
        stagex = [
            (128, 32 + pts_num, 11, 5, True),
            (128, 128, 11, 5, True),
            (128, 128, 11, 5, True),
            (128, 128, 11, 5, True),
            (128, 128, 1, 0, True),
            (pts_num, 128, 1, 0, False),
        ]
        key, self.stage1_params = _make_conv_params(key, backbone + stage1_tail)
        key, self.middle_params = _make_conv_params(key, backbone)
        self.stagex_params = []
        for _ in range(1, config.stages):
            key, p = _make_conv_params(key, stagex)
            self.stagex_params.append(p)

    def _run_stage1(self, x):
        p = self.stage1_params
        for i in range(3):
            x = conv2d(x, p[i])
            x = maxpool3x3s2p1(x)
        for i in range(3, len(p)):
            x = conv2d(x, p[i])
        return x

    def _run_middle(self, x):
        p = self.middle_params
        for i in range(3):
            x = conv2d(x, p[i])
            x = maxpool3x3s2p1(x)
        x = conv2d(x, p[3])
        return x

    def _run_stagex(self, params, x):
        for layer in params:
            x = conv2d(x, layer)
        return x

    def forward(self, inputs_nchw):
        assert inputs_nchw.ndim == 4, "This model accepts 4 dimension input tensor"
        x = jnp.transpose(inputs_nchw, (0, 2, 3, 1))  # NCHW -> NHWC

        batch_cpms = []
        cpm = self._run_stage1(x)
        batch_cpms.append(cpm)
        middle = self._run_middle(x)
        for i in range(1, self.config.stages):
            # NOTE: the original PyTorch forward reuses self.stages[1] for every
            # refinement stage; reproduce that exactly.
            inp = jnp.concatenate([middle, batch_cpms[i - 1]], axis=-1)
            cpm = self._run_stagex(self.stagex_params[0], inp)
            batch_cpms.append(cpm)

        last_nchw = jnp.transpose(batch_cpms[-1], (0, 3, 1, 2))  # (N, pts, H, W)
        peak = jax.vmap(lambda hm: find_tensor_peak_batch(
            hm, self.config.argmax, self.downsample))
        batch_locs, batch_scos = peak(last_nchw)
        batch_cpms_nchw = [jnp.transpose(c, (0, 3, 1, 2)) for c in batch_cpms]
        return batch_cpms_nchw, batch_locs, batch_scos


if __name__ == "__main__":
    key = jax.random.PRNGKey(0)
    config = types.SimpleNamespace(stages=3, argmax=1)
    pts_num = 4

    key, k_in, k_model = jax.random.split(key, 3)
    # input: NCHW, 3 channels (RGB), 32x32 spatial (downsampled 8x -> 4x4 heatmaps)
    x = jax.random.normal(k_in, (2, 3, 32, 32), jnp.float32)

    model = CPM_ori_Pallas(config, pts_num, k_model)
    batch_cpms, batch_locs, batch_scos = model.forward(x)

    jax.block_until_ready(batch_locs)
    jax.block_until_ready(batch_scos)
    for c in batch_cpms:
        jax.block_until_ready(c)

    assert len(batch_cpms) == config.stages
    assert batch_cpms[-1].shape == (2, pts_num, 4, 4)
    assert batch_locs.shape == (2, pts_num, 2)
    assert batch_scos.shape == (2, pts_num)
    assert bool(jnp.all(jnp.isfinite(batch_locs)))
    print("KERNEL_OK")
</pallas_src>

<mosaic_0001>
module attributes {stable_mosaic.version = 11 : i64} {
  func.func @_conv_tap_kernel(%arg0: i32, %arg1: i32, %arg2: memref<1x1024x256xbf16, #tpu.memory_space<vmem>>, %arg3: memref<256x128xbf16, #tpu.memory_space<vmem>>, %arg4: memref<1x128xf32, #tpu.memory_space<vmem>>, %arg5: memref<1x256x128xf32, #tpu.memory_space<vmem>>) attributes {dimension_semantics = [#tpu.dimension_semantics<parallel>, #tpu.dimension_semantics<parallel>], iteration_bounds = array<i64: 2, 4>, scalar_prefetch = 0 : i64, scratch_operands = 0 : i64, tpu.core_type = #tpu.core_type<tc>, window_params = [{transform_indices = @transform_0, window_bounds = array<i64: 1, 1024, 256>}, {pipeline_mode = #tpu.pipeline_mode<synchronous>, transform_indices = @transform_1, window_bounds = array<i64: 256, 128>}, {pipeline_mode = #tpu.pipeline_mode<synchronous>, transform_indices = @transform_2, window_bounds = array<i64: 1, 128>}, {transform_indices = @transform_3, window_bounds = array<i64: 1, 256, 128>}]} {
    %c256_i32 = arith.constant 256 : i32
    %0 = arith.muli %arg1, %c256_i32 : i32
    %c0 = arith.constant 0 : index
    %c0_0 = arith.constant 0 : index
    %1 = vector.load %arg4[%c0, %c0_0] : memref<1x128xf32, #tpu.memory_space<vmem>>, vector<1x128xf32>
    %2 = vector.shape_cast %1 : vector<1x128xf32> to vector<1x128xf32>
    %3 = vector.broadcast %2 : vector<1x128xf32> to vector<256x128xf32>
    %c0_i32 = arith.constant 0 : i32
    %4 = arith.addi %0, %c0_i32 : i32
    %5 = tpu.assume_multiple %4, 16 : i32
    %c0_1 = arith.constant 0 : index
    %6 = arith.index_cast %5 : i32 to index
    %c0_2 = arith.constant 0 : index
    %7 = vector.load %arg2[%c0_1, %6, %c0_2] : memref<1x1024x256xbf16, #tpu.memory_space<vmem>>, vector<1x256x256xbf16>
    %8 = vector.shape_cast %7 : vector<1x256x256xbf16> to vector<256x256xbf16>
    %c0_3 = arith.constant 0 : index
    %c0_4 = arith.constant 0 : index
    %9 = vector.load %arg3[%c0_3, %c0_4] : memref<256x128xbf16, #tpu.memory_space<vmem>>, vector<256x128xbf16>
    %cst = arith.constant dense<0.000000e+00> : vector<256x128xf32>
    %10 = tpu.matmul %8, %9, %cst {dimension_numbers = #tpu.dot_dimension_numbers<[1], [0], [0], [1], [0, 0, 1, 1], [], []>} : vector<256x256xbf16>, vector<256x128xbf16>, vector<256x128xf32> -> vector<256x128xf32>
    %11 = arith.addf %3, %10 : vector<256x128xf32>
    %cst_5 = arith.constant 0.000000e+00 : f32
    %12 = vector.broadcast %cst_5 : f32 to vector<256x128xf32>
    %13 = arith.maximumf %11, %12 : vector<256x128xf32>
    %c0_6 = arith.constant 0 : index
    %c0_7 = arith.constant 0 : index
    %c0_8 = arith.constant 0 : index
    %14 = vector.load %arg5[%c0_6, %c0_7, %c0_8] : memref<1x256x128xf32, #tpu.memory_space<vmem>>, vector<1x256x128xf32>
    %15 = vector.shape_cast %14 : vector<1x256x128xf32> to vector<256x128xf32>
    %16 = vector.shape_cast %13 : vector<256x128xf32> to vector<1x256x128xf32>
    tpu.vector_store %arg5[%c0_6, %c0_7, %c0_8], %16 {strides = array<i32>} : memref<1x256x128xf32, #tpu.memory_space<vmem>>, vector<1x256x128xf32>,
    return
  }
  func.func @transform_0(%arg0: i32, %arg1: i32) -> (i32, i32, i32) {
    %c0_i32 = arith.constant 0 : i32
    %c0_i32_0 = arith.constant 0 : i32
    %c0_i32_1 = arith.constant 0 : i32
    return %arg0, %c0_i32, %c0_i32_0 : i32, i32, i32
  }
  func.func @transform_1(%arg0: i32, %arg1: i32) -> (i32, i32) {
    %c0_i32 = arith.constant 0 : i32
    %c0_i32_0 = arith.constant 0 : i32
    %c0_i32_1 = arith.constant 0 : i32
    return %c0_i32, %c0_i32_0 : i32, i32
  }
  func.func @transform_2(%arg0: i32, %arg1: i32) -> (i32, i32) {
    %c0_i32 = arith.constant 0 : i32
    %c0_i32_0 = arith.constant 0 : i32
    %c0_i32_1 = arith.constant 0 : i32
    return %c0_i32, %c0_i32_0 : i32, i32
  }
  func.func @transform_3(%arg0: i32, %arg1: i32) -> (i32, i32, i32) {
    %c0_i32 = arith.constant 0 : i32
    %c0_i32_0 = arith.constant 0 : i32
    return %arg0, %arg1, %c0_i32 : i32, i32, i32
  }
}

</mosaic_0001>

<bundles_post_ra>
// kernel: fn.1
= control target key start
LH: loop header
LB: loop body
LE: loop exit
PB: predicated region body
PF: predicated region fallthrough
CT: control target
= control target key end

     0   :  { %8 = vsyncpa [#allocation3], 0  ;;  %s1618_s0 = inlined_call_operand.vmem [shape: bf16[2,1024,256], index: 0, kind: input, shape index: {}]   ;;  %s1619_s1 = inlined_call_operand.vmem [shape: bf16[256,128], index: 1, kind: input, shape index: {}]   ;;  %s1620_s2 = inlined_call_operand.vmem [shape: f32[1,128], index: 2, kind: input, shape index: {}]   ;;  %s1621_s3 = inlined_call_operand.hbm [shape: f32[2,1024,128], index: 3, kind: output, shape index: {}]  }
   0x1   :  { %10 = vsyncpa [#allocation3 + $0x1], 0  ;;  %s1321_s12 = smov 0   ;;  %s1323_s13 = smov 0  }
   0x2   :  { %s1325_s14 = smov 0   ;;  %s1327_s15 = smov 0  }
   0x3   :  { %s1329_s16 = smov 0   ;;  %s1331_s17 = smov 0  }
   0x4   :  { %s1333_s18 = smov 0   ;;  %s1335_s19 = smov 0  }
   0x5 LB: > { %s869_s20 = sadd.s32 4294967295, %s1296_s19   ;;  %s870_s21 = sadd.s32 4294967294, %s1296_s19   ;;  %s1296_s19 = sphi %s1335_s19, %s16_s19   ;;  %s1292_s18 = sphi %s1333_s18, %s1630_s18   ;;  %s1288_s17 = sphi %s1331_s17, %s1629_s17   ;;  %s1284_s16 = sphi %s1329_s16, %s1628_s16   ;;  %s1280_s15 = sphi %s1327_s15, %s1627_s15   ;;  %s1276_s14 = sphi %s1325_s14, %s1626_s14   ;;  %s1272_s13 = sphi %s1323_s13, %s1625_s13   ;;  %s1268_s12 = sphi %s1321_s12, %s1624_s12  }
   0x6   : > { %s25_s22 = sadd.s32 1, %s1288_s17  ;;  %s28_s23 = sadd.s32 1, %s1292_s18 }
   0x7   : > { %p26_p0 = scmp.ge.s32.totalorder %s25_s22, 4  ;;  %p115_p1 = scmp.ne.s32.totalorder %s1276_s14, %s1272_s13 }
   0x8   : > { %p116_p2 = scmp.eq.s32.totalorder %s869_s20, 7  ;;  %p121_p5 = scmp.ne.s32.totalorder %s1272_s13, %s1268_s12 }
   0x9   : > { %s1632_s22 = smov (%p26_p0, %s25_s22), 0  ;;  %s1634_s23 = smov (!%p26_p0, %s28_s23), %s1292_s18 }
   0xa   : > { %s101_s24 = ssub.s32 %s1288_s17, %s1632_s22  ;;  %p1372_p3 = por %p116_p2, %p115_p1 }
   0xb   : > { %p30_p4 = scmp.ge.s32.totalorder %s1634_s23, 2  ;;  %p122_p6 = scmp.eq.s32.totalorder %s870_s21, 7 }
   0xc   : > { %p873_p7 = scmp.ge.s32.totalorder %s1296_s19, 1  ;;  %p154_p9 = scmp.lt.s32.totalorder %s1296_s19, 9 }
   0xd   : > { %s1636_s23 = smov (%p30_p4, %s1634_s23), 0  ;;  %p1381_p8 = por %p122_p6, %p121_p5 }
   0xe   : > { %s100_s27 = ssub.s32 %s1292_s18, %s1636_s23  ;;  %s105_s28 = sadd.s32 1, %s1276_s14 }
   0xf   : > { %s102_s29 = sor.u32 %s101_s24, %s100_s27  ;;  %p155_p10 = pnand %p873_p7, %p154_p9 }
  0x10   : > { %p103_p11 = scmp.eq.s32.totalorder %s102_s29, 0  ;;  %v1138_v0 = vld [vmem:[%s1619_s1 + $0x40] sm:$0xff] (!%p155_p10)   ;;  %p178_p12 = scmp.lt.s32.totalorder (!%p155_p10), %s1284_s16, 1  ;;  %v1140_v2 = vld [vmem:[%s1619_s1 + $0x48] sm:$0xff] (!%p155_p10)   ;;  %v1142_v4 = vld [vmem:[%s1619_s1 + $0x50] sm:$0xff] (!%p155_p10)  }
  0x11   : > { %158 = sbr.rel (%p155_p10) target bundleno = 342 (0x156), region = 32  ;;  %v1139_v1 = vld [vmem:[%s1619_s1] sm:$0xff] (!%p155_p10)   ;;  %937 = vmatprep.subr.bf16.mxu0 (!%p155_p10), %v1138_v0  ;;  %1049 = vmatprep.subr.bf16.mxu1 (!%p155_p10), %v1138_v0  ;;  %v1141_v3 = vld [vmem:[%s1619_s1 + $0x8] sm:$0xff] (!%p155_p10)   ;;  %v1143_v5 = vld [vmem:[%s1619_s1 + $0x10] sm:$0xff] (!%p155_p10)   ;;  %s877_s11 = sshll.u32 (!%p155_p10), %s1280_s15, 8 }
  0x12   : > { %s1390_s30 = scalar_select %p103_p11, %s1276_s14, %s105_s28  }
  0x13   : > { %938 = vmatpush3.bf16.msra.mxu0 (!%p155_p10), %v1139_v1  ;;  %1057 = vmatpush3.bf16.msra.mxu1 (!%p155_p10), %v1139_v1  ;;  %v1144_v6 = vld [vmem:[%s1619_s1 + $0x58] sm:$0xff] (!%p155_p10)   ;;  %v1146_v8 = vld [vmem:[%s1619_s1 + $0x60] sm:$0xff] (!%p155_p10)   ;;  %v1148_v10 = vld [vmem:[%s1619_s1 + $0x68] sm:$0xff] (!%p155_p10)   ;;  %s175_s28 = sand.u32 (!%p155_p10), 1, %s1272_s13   ;;  %s930_s6 = sshll.u32 (!%p155_p10), %s1280_s15, 5 }
  0x14   : > { %939 = vmatprep.subr.bf16.mxu0 (!%p155_p10), %v1140_v2  ;;  %1050 = vmatprep.subr.bf16.mxu1 (!%p155_p10), %v1140_v2  ;;  %v1145_v7 = vld [vmem:[%s1619_s1 + $0x18] sm:$0xff] (!%p155_p10)   ;;  %v1147_v9 = vld [vmem:[%s1619_s1 + $0x20] sm:$0xff] (!%p155_p10)   ;;  %v1149_v13 = vld [vmem:[%s1619_s1 + $0x28] sm:$0xff] (!%p155_p10)   ;;  %s931_s7 = sshll.u32 (!%p155_p10), %s1284_s16, 7  ;;  %s1566_s20 = scalar_lea.sflag (!%p155_p10), [#allocation3], %s175_s28 }
  0x15   : > { %v1150_v14 = vld [vmem:[%s1619_s1 + $0x70] sm:$0xff] (!%p155_p10)   ;;  %v1152_v16 = vld [vmem:[%s1619_s1 + $0x78] sm:$0xff] (!%p155_p10)   ;;  %v1484_v50 = vld [vmem:[%s1620_s2] ss:$0 sm:$0xff] (!%p155_p10)  ;;  %s788_s8 = sadd.s32 (!%p155_p10), %s931_s7, %s930_s6 }
  0x16   : > { %v1151_v15 = vld [vmem:[%s1619_s1 + $0x30] sm:$0xff] (!%p155_p10)   ;;  %v1153_v17 = vld [vmem:[%s1619_s1 + $0x38] sm:$0xff] (!%p155_p10)   ;;  %s932_s15 = sshll.u32 (!%p155_p10), %s788_s8, 7 }
  0x17   : > { %940 = vmatpush3.bf16.msra.mxu0 (!%p155_p10), %v1141_v3  ;;  %1058 = vmatpush3.bf16.msra.mxu1 (!%p155_p10), %v1141_v3 }
  0x18   : > { %s179_s24 = scalar_select %p178_p12, %s1284_s16, 1  ;;  %941 = vmatprep.subr.bf16.mxu0 %v1142_v4  ;;  %1051 = vmatprep.subr.bf16.mxu1 %v1142_v4 }
  0x1a   : > { %s935_s5 = sshll.u32 %s179_s24, 10  ;;  %s1298_s24 = smov [#allocation2]  }
  0x1b   : > { %942 = vmatpush3.bf16.msra.mxu0 %v1143_v5  ;;  %1059 = vmatpush3.bf16.msra.mxu1 %v1143_v5  ;;  %s182_s10 = scalar_lea.vmem %s1618_s0, %s935_s5  ;;  %s874_s5 = sshll.u32 %s175_s28, 8 }
  0x1c   : > { %943 = vmatprep.subr.bf16.mxu0 %v1144_v6  ;;  %1052 = vmatprep.subr.bf16.mxu1 %v1144_v6  ;;  %s1425_s27 = scalar_lea.vmem %s182_s10, %s877_s11  ;;  %s1556_s11 = scalar_lea.hbm %s1621_s3, %s932_s15 }
  0x1d   : > { %v1156_v11 = vld [vmem:[%s1425_s27 + $0x4] ss:$8 sps:$4 sm:$0xff]   ;;  %v1154_v18 = vld [vmem:[%s1425_s27] ss:$8 sps:$4 sm:$0xff]   ;;  %v1160_v20 = vld [vmem:[%s1425_s27 + $0x14] ss:$8 sps:$4 sm:$0xff]  }
  0x1e   : > { %v1159_v12 = vld [vmem:[%s1425_s27 + $0x84] ss:$8 sps:$4 sm:$0xff]   ;;  %550 = vmatprep.mubr.bf16.mxu0 %v1156_v11  ;;  %v1157_v19 = vld [vmem:[%s1425_s27 + $0x80] ss:$8 sps:$4 sm:$0xff]   ;;  %v1162_v21 = vld [vmem:[%s1425_s27 + $0x94] ss:$8 sps:$4 sm:$0xff]  }
  0x1f   : > { %944 = vmatpush3.bf16.msra.mxu0 %v1145_v7  ;;  %1060 = vmatpush3.bf16.msra.mxu1 %v1145_v7  ;;  %v1164_v22 = vld [vmem:[%s1425_s27 + $0x10] ss:$8 sps:$4 sm:$0xff]   ;;  %v1166_v24 = vld [vmem:[%s1425_s27 + $0x24] ss:$8 sps:$4 sm:$0xff]   ;;  %v1170_v26 = vld [vmem:[%s1425_s27 + $0x20] ss:$8 sps:$4 sm:$0xff]  }
  0x20   : > { %945 = vmatprep.subr.bf16.mxu0 %v1146_v8  ;;  %1053 = vmatprep.subr.bf16.mxu1 %v1146_v8  ;;  %v1165_v23 = vld [vmem:[%s1425_s27 + $0x90] ss:$8 sps:$4 sm:$0xff]   ;;  %v1168_v25 = vld [vmem:[%s1425_s27 + $0xa4] ss:$8 sps:$4 sm:$0xff]   ;;  %v1171_v27 = vld [vmem:[%s1425_s27 + $0xa0] ss:$8 sps:$4 sm:$0xff]  }
  0x21   : > { %614 = vmatprep.mubr.bf16.mxu1 %v1159_v12  ;;  %v1172_v28 = vld [vmem:[%s1425_s27 + $0x34] ss:$8 sps:$4 sm:$0xff]   ;;  %v1176_v30 = vld [vmem:[%s1425_s27 + $0x30] ss:$8 sps:$4 sm:$0xff]   ;;  %v1178_v32 = vld [vmem:[%s1425_s27 + $0x44] ss:$8 sps:$4 sm:$0xff]  }
  0x22   : > { %v1174_v29 = vld [vmem:[%s1425_s27 + $0xb4] ss:$8 sps:$4 sm:$0xff]   ;;  %v1177_v31 = vld [vmem:[%s1425_s27 + $0xb0] ss:$8 sps:$4 sm:$0xff]   ;;  %v1180_v33 = vld [vmem:[%s1425_s27 + $0xc4] ss:$8 sps:$4 sm:$0xff]  }
  0x23   : > { %946 = vmatpush3.bf16.msra.mxu0 %v1147_v9  ;;  %1061 = vmatpush3.bf16.msra.mxu1 %v1147_v9  ;;  %v1182_v34 = vld [vmem:[%s1425_s27 + $0x40] ss:$8 sps:$4 sm:$0xff]   ;;  %v1184_v36 = vld [vmem:[%s1425_s27 + $0x54] ss:$8 sps:$4 sm:$0xff]   ;;  %v1188_v38 = vld [vmem:[%s1425_s27 + $0x50] ss:$8 sps:$4 sm:$0xff]  }
  0x24   : > { %947 = vmatprep.subr.bf16.mxu0 %v1148_v10  ;;  %1054 = vmatprep.subr.bf16.mxu1 %v1148_v10  ;;  %v1183_v35 = vld [vmem:[%s1425_s27 + $0xc0] ss:$8 sps:$4 sm:$0xff]   ;;  %v1186_v37 = vld [vmem:[%s1425_s27 + $0xd4] ss:$8 sps:$4 sm:$0xff]   ;;  %v1189_v39 = vld [vmem:[%s1425_s27 + $0xd0] ss:$8 sps:$4 sm:$0xff]  }
  0x25   : > { %v1190_v40 = vld [vmem:[%s1425_s27 + $0x64] ss:$8 sps:$4 sm:$0xff]   ;;  %v1194_v42 = vld [vmem:[%s1425_s27 + $0x60] ss:$8 sps:$4 sm:$0xff]   ;;  %v1196_v44 = vld [vmem:[%s1425_s27 + $0x74] ss:$8 sps:$4 sm:$0xff]  }
  0x26   : > { %v1192_v41 = vld [vmem:[%s1425_s27 + $0xe4] ss:$8 sps:$4 sm:$0xff]   ;;  %v1195_v43 = vld [vmem:[%s1425_s27 + $0xe0] ss:$8 sps:$4 sm:$0xff]   ;;  %v1198_v45 = vld [vmem:[%s1425_s27 + $0xf4] ss:$8 sps:$4 sm:$0xff]  }
  0x27   : > { %948 = vmatpush3.bf16.msra.mxu0 %v1149_v13  ;;  %1062 = vmatpush3.bf16.msra.mxu1 %v1149_v13  ;;  %v1200_v46 = vld [vmem:[%s1425_s27 + $0x70] ss:$8 sps:$4 sm:$0xff]   ;;  %s1206_s29 = sshll.u32 %s1298_s24, 4  ;;  %s1207_s29 = int_to_ptr.vmem [resolvable:$false] %s1206_s29 }
  0x28   : > { %949 = vmatprep.subr.bf16.mxu0 %v1150_v14  ;;  %1055 = vmatprep.subr.bf16.mxu1 %v1150_v14  ;;  %v1201_v47 = vld [vmem:[%s1425_s27 + $0xf0] ss:$8 sps:$4 sm:$0xff]   ;;  %s1492_s27 = scalar_lea.vmem [#allocation2], %s874_s5  ;;  %s1208_s4 = scalar_lea.vmem %s1207_s29, 8192 }
  0x29   : > { %s791_s16 = sshll.u32 %s1492_s27, 4  ;;  %s1558_s16 = int_to_ptr.vmem [resolvable:$true] %s791_s16 }
  0x2a   : > { %s1202_s21 = scalar_lea.vmem %s1558_s16, 4096  ;;  %p1209_p2 = scmp.lt.s32.totalorder %s1558_s16, %s1207_s29 }
  0x2b   : > { %950 = vmatpush3.bf16.msra.mxu0 %v1151_v15  ;;  %1063 = vmatpush3.bf16.msra.mxu1 %v1151_v15  ;;  %p1203_p13 = scmp.ne.s32.totalorder %s1558_s16, %s1202_s21  ;;  %p1210_p4 = scmp.lt.s32.totalorder %s1208_s4, %s1202_s21 }
  0x2c   : > { %951 = vmatprep.subr.bf16.mxu0 %v1152_v16  ;;  %1056 = vmatprep.subr.bf16.mxu1 %v1152_v16 }
  0x2d   : > { %p1204_p0 = pnand %p1203_p13, %p1372_p3  ;;  %p1211_p5 = por %p1210_p4, %p1209_p2 }
  0x2f   : > { %952 = vmatpush3.bf16.msra.mxu0 %v1153_v17  ;;  %1064 = vmatpush3.bf16.msra.mxu1 %v1153_v17  ;;  %p1205_p1 = pneg %p1204_p0 }
  0x31   : > { %p1212_p6 = pnand %p1211_p5, %p1205_p1 }
  0x32   : > { %551 = vmatmul.mubr.bf16.vlgmr.msra.gmra.mrb[0].mxu0 %v1154_v18  ;;  %615 = vmatmul.mubr.bf16.vlgmr.msra.gmra.mrb[0].mxu1 %v1157_v19 }
  0x33   : > { %558 = vmatprep.mubr.bf16.mxu0 %v1160_v20  ;;  %622 = vmatprep.mubr.bf16.mxu1 %v1162_v21 }
  0x3a   : > { %559 = vmatmul.mubr.bf16.gmra.mrb[4].mxu0 %v1164_v22  ;;  %623 = vmatmul.mubr.bf16.gmra.mrb[4].mxu1 %v1165_v23 }
  0x3b   : > { %566 = vmatprep.mubr.bf16.mxu0 %v1166_v24  ;;  %630 = vmatprep.mubr.bf16.mxu1 %v1168_v25 }
  0x42   : > { %567 = vmatmul.mubr.bf16.gmra.mrb[8].mxu0 %v1170_v26  ;;  %631 = vmatmul.mubr.bf16.gmra.mrb[8].mxu1 %v1171_v27 }
  0x43   : > { %574 = vmatprep.mubr.bf16.mxu0 %v1172_v28  ;;  %638 = vmatprep.mubr.bf16.mxu1 %v1174_v29 }
  0x4a   : > { %575 = vmatmul.mubr.bf16.gmra.mrb[12].mxu0 %v1176_v30  ;;  %639 = vmatmul.mubr.bf16.gmra.mrb[12].mxu1 %v1177_v31 }
  0x4b   : > { %582 = vmatprep.mubr.bf16.mxu0 %v1178_v32  ;;  %646 = vmatprep.mubr.bf16.mxu1 %v1180_v33 }
  0x52   : > { %583 = vmatmul.mubr.bf16.gmra.mrb[16].mxu0 %v1182_v34  ;;  %647 = vmatmul.mubr.bf16.gmra.mrb[16].mxu1 %v1183_v35 }
  0x53   : > { %590 = vmatprep.mubr.bf16.mxu0 %v1184_v36  ;;  %654 = vmatprep.mubr.bf16.mxu1 %v1186_v37 }
  0x5a   : > { %591 = vmatmul.mubr.bf16.gmra.mrb[20].mxu0 %v1188_v38  ;;  %655 = vmatmul.mubr.bf16.gmra.mrb[20].mxu1 %v1189_v39 }
  0x5b   : > { %598 = vmatprep.mubr.bf16.mxu0 %v1190_v40  ;;  %662 = vmatprep.mubr.bf16.mxu1 %v1192_v41 }
  0x62   : > { %599 = vmatmul.mubr.bf16.gmra.mrb[24].mxu0 %v1194_v42  ;;  %663 = vmatmul.mubr.bf16.gmra.mrb[24].mxu1 %v1195_v43 }
  0x63   : > { %606 = vmatprep.mubr.bf16.mxu0 %v1196_v44  ;;  %670 = vmatprep.mubr.bf16.mxu1 %v1198_v45 }
  0x6a   : > { %607 = vmatmul.mubr.bf16.gmra.mrb[28].mxu0 %v1200_v46  ;;  %671 = vmatmul.mubr.bf16.gmra.mrb[28].mxu1 %v1201_v47 }
 0x105   : > { %v953_v48 = vpop.f32.mrb[0].mxu0  ;;  %v1001_v49 = vpop.f32.mrb[0].mxu1 }
 0x106   : > { %v954_v51 = vpop.f32.mrb[1].mxu0  ;;  %v1002_v52 = vpop.f32.mrb[1].mxu1 }
 0x107   : > { %v955_v53 = vadd.f32 %v954_v51, %v953_v48  ;;  %v1003_v54 = vadd.f32 %v1002_v52, %v1001_v49  ;;  %v956_v55 = vpop.f32.mrb[2].mxu0  ;;  %v1004_v56 = vpop.f32.mrb[2].mxu1 }
 0x108   : > { %v957_v57 = vpop.f32.mrb[3].mxu0  ;;  %v1005_v58 = vpop.f32.mrb[3].mxu1 }
 0x109   : > { %v679_v59 = vadd.f32 %v955_v53, %v1484_v50  ;;  %v695_v60 = vadd.f32 %v1003_v54, %v1484_v50  ;;  %v958_v61 = vadd.f32 %v957_v57, %v956_v55  ;;  %v1006_v62 = vadd.f32 %v1005_v58, %v1004_v56 }
 0x10b   : > { %v711_v63 = vmax.f32 %v679_v59, 0.0  ;;  %v727_v0 = vmax.f32 %v695_v60, 0.0  ;;  %v680_v1 = vadd.f32 %v958_v61, %v1484_v50  ;;  %v696_v2 = vadd.f32 %v1006_v62, %v1484_v50 }
 0x10d   : > { %743 = vst [vmem:[%s1492_s27] sm:$0xff] %v711_v63  ;;  %759 = vst [vmem:[%s1492_s27 + $0x80] sm:$0xff] %v727_v0  ;;  %v712_v3 = vmax.f32 %v680_v1, 0.0  ;;  %v728_v4 = vmax.f32 %v696_v2, 0.0  ;;  %v959_v5 = vpop.f32.mrb[4].mxu0  ;;  %v1007_v6 = vpop.f32.mrb[4].mxu1 }
 0x10e   : > { %v960_v7 = vpop.f32.mrb[5].mxu0  ;;  %v1008_v8 = vpop.f32.mrb[5].mxu1 }
 0x10f   : > { %744 = vst [vmem:[%s1492_s27 + $0x8] sm:$0xff] %v712_v3  ;;  %760 = vst [vmem:[%s1492_s27 + $0x88] sm:$0xff] %v728_v4  ;;  %v961_v9 = vadd.f32 %v960_v7, %v959_v5  ;;  %v1009_v10 = vadd.f32 %v1008_v8, %v1007_v6  ;;  %v962_v11 = vpop.f32.mrb[6].mxu0  ;;  %v1010_v12 = vpop.f32.mrb[6].mxu1 }
 0x110   : > { %v963_v13 = vpop.f32.mrb[7].mxu0  ;;  %v1011_v14 = vpop.f32.mrb[7].mxu1 }
 0x111   : > { %v681_v15 = vadd.f32 %v961_v9, %v1484_v50  ;;  %v697_v16 = vadd.f32 %v1009_v10, %v1484_v50  ;;  %v964_v17 = vadd.f32 %v963_v13, %v962_v11  ;;  %v1012_v18 = vadd.f32 %v1011_v14, %v1010_v12 }
 0x113   : > { %v713_v19 = vmax.f32 %v681_v15, 0.0  ;;  %v729_v20 = vmax.f32 %v697_v16, 0.0  ;;  %v682_v21 = vadd.f32 %v964_v17, %v1484_v50  ;;  %v698_v22 = vadd.f32 %v1012_v18, %v1484_v50 }
 0x115   : > { %745 = vst [vmem:[%s1492_s27 + $0x10] sm:$0xff] %v713_v19  ;;  %761 = vst [vmem:[%s1492_s27 + $0x90] sm:$0xff] %v729_v20  ;;  %v714_v23 = vmax.f32 %v682_v21, 0.0  ;;  %v730_v24 = vmax.f32 %v698_v22, 0.0  ;;  %v965_v25 = vpop.f32.mrb[8].mxu0  ;;  %v1013_v26 = vpop.f32.mrb[8].mxu1 }
 0x116   : > { %v966_v27 = vpop.f32.mrb[9].mxu0  ;;  %v1014_v28 = vpop.f32.mrb[9].mxu1 }
 0x117   : > { %746 = vst [vmem:[%s1492_s27 + $0x18] sm:$0xff] %v714_v23  ;;  %762 = vst [vmem:[%s1492_s27 + $0x98] sm:$0xff] %v730_v24  ;;  %v967_v29 = vadd.f32 %v966_v27, %v965_v25  ;;  %v1015_v30 = vadd.f32 %v1014_v28, %v1013_v26  ;;  %v968_v31 = vpop.f32.mrb[10].mxu0  ;;  %v1016_v32 = vpop.f32.mrb[10].mxu1 }
 0x118   : > { %v969_v33 = vpop.f32.mrb[11].mxu0  ;;  %v1017_v34 = vpop.f32.mrb[11].mxu1 }
 0x119   : > { %v683_v35 = vadd.f32 %v967_v29, %v1484_v50  ;;  %v699_v36 = vadd.f32 %v1015_v30, %v1484_v50  ;;  %v970_v37 = vadd.f32 %v969_v33, %v968_v31  ;;  %v1018_v38 = vadd.f32 %v1017_v34, %v1016_v32 }
 0x11b   : > { %v715_v39 = vmax.f32 %v683_v35, 0.0  ;;  %v731_v40 = vmax.f32 %v699_v36, 0.0  ;;  %v684_v41 = vadd.f32 %v970_v37, %v1484_v50  ;;  %v700_v42 = vadd.f32 %v1018_v38, %v1484_v50 }
 0x11d   : > { %747 = vst [vmem:[%s1492_s27 + $0x20] sm:$0xff] %v715_v39  ;;  %763 = vst [vmem:[%s1492_s27 + $0xa0] sm:$0xff] %v731_v40  ;;  %v716_v43 = vmax.f32 %v684_v41, 0.0  ;;  %v732_v44 = vmax.f32 %v700_v42, 0.0  ;;  %v971_v45 = vpop.f32.mrb[12].mxu0  ;;  %v1019_v46 = vpop.f32.mrb[12].mxu1 }
 0x11e   : > { %v972_v47 = vpop.f32.mrb[13].mxu0  ;;  %v1020_v48 = vpop.f32.mrb[13].mxu1 }
 0x11f   : > { %748 = vst [vmem:[%s1492_s27 + $0x28] sm:$0xff] %v716_v43  ;;  %764 = vst [vmem:[%s1492_s27 + $0xa8] sm:$0xff] %v732_v44  ;;  %v973_v49 = vadd.f32 %v972_v47, %v971_v45  ;;  %v1021_v51 = vadd.f32 %v1020_v48, %v1019_v46  ;;  %v974_v52 = vpop.f32.mrb[14].mxu0  ;;  %v1022_v53 = vpop.f32.mrb[14].mxu1 }
 0x120   : > { %v975_v54 = vpop.f32.mrb[15].mxu0  ;;  %v1023_v55 = vpop.f32.mrb[15].mxu1 }
 0x121   : > { %v685_v56 = vadd.f32 %v973_v49, %v1484_v50  ;;  %v701_v57 = vadd.f32 %v1021_v51, %v1484_v50  ;;  %v976_v58 = vadd.f32 %v975_v54, %v974_v52  ;;  %v1024_v59 = vadd.f32 %v1023_v55, %v1022_v53 }
 0x123   : > { %v717_v60 = vmax.f32 %v685_v56, 0.0  ;;  %v733_v61 = vmax.f32 %v701_v57, 0.0  ;;  %v686_v62 = vadd.f32 %v976_v58, %v1484_v50  ;;  %v702_v63 = vadd.f32 %v1024_v59, %v1484_v50 }
 0x125   : > { %749 = vst [vmem:[%s1492_s27 + $0x30] sm:$0xff] %v717_v60  ;;  %765 = vst [vmem:[%s1492_s27 + $0xb0] sm:$0xff] %v733_v61  ;;  %v718_v0 = vmax.f32 %v686_v62, 0.0  ;;  %v734_v1 = vmax.f32 %v702_v63, 0.0  ;;  %v977_v2 = vpop.f32.mrb[16].mxu0  ;;  %v1025_v3 = vpop.f32.mrb[16].mxu1 }
 0x126   : > { %v978_v4 = vpop.f32.mrb[17].mxu0  ;;  %v1026_v5 = vpop.f32.mrb[17].mxu1 }
 0x127   : > { %750 = vst [vmem:[%s1492_s27 + $0x38] sm:$0xff] %v718_v0  ;;  %766 = vst [vmem:[%s1492_s27 + $0xb8] sm:$0xff] %v734_v1  ;;  %v979_v6 = vadd.f32 %v978_v4, %v977_v2  ;;  %v1027_v7 = vadd.f32 %v1026_v5, %v1025_v3  ;;  %v980_v8 = vpop.f32.mrb[18].mxu0  ;;  %v1028_v9 = vpop.f32.mrb[18].mxu1 }
 0x128   : > { %v981_v10 = vpop.f32.mrb[19].mxu0  ;;  %v1029_v11 = vpop.f32.mrb[19].mxu1 }
 0x129   : > { %v687_v12 = vadd.f32 %v979_v6, %v1484_v50  ;;  %v703_v13 = vadd.f32 %v1027_v7, %v1484_v50  ;;  %v982_v14 = vadd.f32 %v981_v10, %v980_v8  ;;  %v1030_v15 = vadd.f32 %v1029_v11, %v1028_v9 }
 0x12b   : > { %v719_v16 = vmax.f32 %v687_v12, 0.0  ;;  %v735_v17 = vmax.f32 %v703_v13, 0.0  ;;  %v688_v18 = vadd.f32 %v982_v14, %v1484_v50  ;;  %v704_v19 = vadd.f32 %v1030_v15, %v1484_v50 }
 0x12d   : > { %751 = vst [vmem:[%s1492_s27 + $0x40] sm:$0xff] %v719_v16  ;;  %767 = vst [vmem:[%s1492_s27 + $0xc0] sm:$0xff] %v735_v17  ;;  %v720_v20 = vmax.f32 %v688_v18, 0.0  ;;  %v736_v21 = vmax.f32 %v704_v19, 0.0  ;;  %v983_v22 = vpop.f32.mrb[20].mxu0  ;;  %v1031_v23 = vpop.f32.mrb[20].mxu1 }
 0x12e   : > { %v984_v24 = vpop.f32.mrb[21].mxu0  ;;  %v1032_v25 = vpop.f32.mrb[21].mxu1 }
 0x12f   : > { %752 = vst [vmem:[%s1492_s27 + $0x48] sm:$0xff] %v720_v20  ;;  %768 = vst [vmem:[%s1492_s27 + $0xc8] sm:$0xff] %v736_v21  ;;  %v985_v26 = vadd.f32 %v984_v24, %v983_v22  ;;  %v1033_v27 = vadd.f32 %v1032_v25, %v1031_v23  ;;  %v986_v28 = vpop.f32.mrb[22].mxu0  ;;  %v1034_v29 = vpop.f32.mrb[22].mxu1 }
 0x130   : > { %v987_v30 = vpop.f32.mrb[23].mxu0  ;;  %v1035_v31 = vpop.f32.mrb[23].mxu1 }
 0x131   : > { %v689_v32 = vadd.f32 %v985_v26, %v1484_v50  ;;  %v705_v33 = vadd.f32 %v1033_v27, %v1484_v50  ;;  %v988_v34 = vadd.f32 %v987_v30, %v986_v28  ;;  %v1036_v35 = vadd.f32 %v1035_v31, %v1034_v29 }
 0x133   : > { %v721_v36 = vmax.f32 %v689_v32, 0.0  ;;  %v737_v37 = vmax.f32 %v705_v33, 0.0  ;;  %v690_v38 = vadd.f32 %v988_v34, %v1484_v50  ;;  %v706_v39 = vadd.f32 %v1036_v35, %v1484_v50 }
 0x135   : > { %753 = vst [vmem:[%s1492_s27 + $0x50] sm:$0xff] %v721_v36  ;;  %769 = vst [vmem:[%s1492_s27 + $0xd0] sm:$0xff] %v737_v37  ;;  %v722_v40 = vmax.f32 %v690_v38, 0.0  ;;  %v738_v41 = vmax.f32 %v706_v39, 0.0  ;;  %v989_v42 = vpop.f32.mrb[24].mxu0  ;;  %v1037_v43 = vpop.f32.mrb[24].mxu1 }
 0x136   : > { %v990_v44 = vpop.f32.mrb[25].mxu0  ;;  %v1038_v45 = vpop.f32.mrb[25].mxu1 }
 0x137   : > { %754 = vst [vmem:[%s1492_s27 + $0x58] sm:$0xff] %v722_v40  ;;  %770 = vst [vmem:[%s1492_s27 + $0xd8] sm:$0xff] %v738_v41  ;;  %v991_v46 = vadd.f32 %v990_v44, %v989_v42  ;;  %v1039_v47 = vadd.f32 %v1038_v45, %v1037_v43  ;;  %v992_v48 = vpop.f32.mrb[26].mxu0  ;;  %v1040_v49 = vpop.f32.mrb[26].mxu1 }
 0x138   : > { %v993_v51 = vpop.f32.mrb[27].mxu0  ;;  %v1041_v52 = vpop.f32.mrb[27].mxu1 }
 0x139   : > { %v691_v53 = vadd.f32 %v991_v46, %v1484_v50  ;;  %v707_v54 = vadd.f32 %v1039_v47, %v1484_v50  ;;  %v994_v55 = vadd.f32 %v993_v51, %v992_v48  ;;  %v1042_v56 = vadd.f32 %v1041_v52, %v1040_v49 }
 0x13b   : > { %v723_v57 = vmax.f32 %v691_v53, 0.0  ;;  %v739_v58 = vmax.f32 %v707_v54, 0.0  ;;  %v692_v59 = vadd.f32 %v994_v55, %v1484_v50  ;;  %v708_v60 = vadd.f32 %v1042_v56, %v1484_v50 }
 0x13d   : > { %755 = vst [vmem:[%s1492_s27 + $0x60] sm:$0xff] %v723_v57  ;;  %771 = vst [vmem:[%s1492_s27 + $0xe0] sm:$0xff] %v739_v58  ;;  %v724_v61 = vmax.f32 %v692_v59, 0.0  ;;  %v740_v62 = vmax.f32 %v708_v60, 0.0  ;;  %v995_v63 = vpop.f32.mrb[28].mxu0  ;;  %v1043_v0 = vpop.f32.mrb[28].mxu1 }
 0x13e   : > { %v996_v1 = vpop.f32.mrb[29].mxu0  ;;  %v1044_v2 = vpop.f32.mrb[29].mxu1 }
 0x13f   : > { %756 = vst [vmem:[%s1492_s27 + $0x68] sm:$0xff] %v724_v61  ;;  %772 = vst [vmem:[%s1492_s27 + $0xe8] sm:$0xff] %v740_v62  ;;  %v997_v3 = vadd.f32 %v996_v1, %v995_v63  ;;  %v1045_v4 = vadd.f32 %v1044_v2, %v1043_v0  ;;  %v998_v5 = vpop.f32.mrb[30].mxu0  ;;  %v1046_v6 = vpop.f32.mrb[30].mxu1 }
 0x140   : > { %v999_v7 = vpop.f32.mrb[31].mxu0  ;;  %v1047_v8 = vpop.f32.mrb[31].mxu1 }
 0x141   : > { %v693_v9 = vadd.f32 %v997_v3, %v1484_v50  ;;  %v709_v10 = vadd.f32 %v1045_v4, %v1484_v50  ;;  %v1000_v11 = vadd.f32 %v999_v7, %v998_v5  ;;  %v1048_v12 = vadd.f32 %v1047_v8, %v1046_v6 }
 0x143   : > { %v725_v13 = vmax.f32 %v693_v9, 0.0  ;;  %v741_v14 = vmax.f32 %v709_v10, 0.0  ;;  %v694_v15 = vadd.f32 %v1000_v11, %v1484_v50  ;;  %v710_v16 = vadd.f32 %v1048_v12, %v1484_v50 }
 0x145   : > { %757 = vst [vmem:[%s1492_s27 + $0x70] sm:$0xff] %v725_v13  ;;  %773 = vst [vmem:[%s1492_s27 + $0xf0] sm:$0xff] %v741_v14  ;;  %v726_v17 = vmax.f32 %v694_v15, 0.0  ;;  %v742_v18 = vmax.f32 %v710_v16, 0.0 }
 0x147   : > { %758 = vst [vmem:[%s1492_s27 + $0x78] sm:$0xff] %v726_v17  ;;  %774 = vst [vmem:[%s1492_s27 + $0xf8] sm:$0xff] %v742_v18 }
 0x148   : > { %1215 = shalt.err (!%p1212_p6)
}
 0x149   : > { %s1216_s28 = scalar_lea.hbm %s1556_s11, 4096  ;;  %s1220_s6 = scalar_lea.hbm %s1621_s3, 32768 }
 0x14a   : > { %p1217_p7 = scmp.ne.s32.totalorder %s1556_s11, %s1216_s28  ;;  %p1221_p11 = scmp.lt.u32.totalorder %s1556_s11, %s1621_s3 }
 0x14b   : > { %p1222_p12 = scmp.lt.u32.totalorder %s1220_s6, %s1216_s28  ;;  %p1224_p0 = scmp.lt.u32.totalorder %s1216_s28, %s1556_s11 }
 0x14c   : > { %p1218_p9 = pnand %p1217_p7, %p1372_p3 }
 0x14d   : > { %p1223_p13 = por %p1222_p12, %p1221_p11 }
 0x14e   : > { %p1219_p10 = pneg %p1218_p9 }
 0x14f   : > { %p1225_p1 = por %p1224_p0, %p1223_p13 }
 0x151   : > { %p1226_p2 = pnand %p1225_p1, %p1219_p10 }
 0x153   : > { %1229 = shalt.err (!%p1226_p2)
}
 0x154   : > { %s1299_s15 = smov 128   ;;  %s1300_s9 = smov 8  }
 0x155   : > { %1065 = dma.vmem_to_hbm [thread:$0]  (%p1372_p3), %s1558_s16, 4096, %s1556_s11, %s1566_s20, %s1299_s15, %s1299_s15, %s1300_s9  }
 0x156 PF: > { %p1071_p4 = scmp.ge.s32.totalorder %s1296_s19, 2  ;;  %s806_s10 = sand.u32 1, %s1268_s12  }
 0x157   : > { %s807_s21 = scalar_lea.sflag [#allocation3], %s806_s10 }
 0x158   : > { %p1068_p5 = pnand %p1071_p4, %p1381_p8 }
 0x15a   : > { %1263 = dma.done.wait (!%p1068_p5), %s807_s21, 4096  }
 0x15b   : > { %1265 = vsyncadd (!%p1068_p5), %s807_s21, 4294963200  ;;  %s16_s19 = sadd.s32 1, %s1296_s19   ;;  %s1624_s12 = smov %s1272_s13 }
 0x15c   : > { %p13_p6 = scmp.ge.s32.totalorder %s16_s19, 10   ;;  %s1625_s13 = smov %s1276_s14 }
 0x15d   : > { %s1626_s14 = smov %s1390_s30  ;;  %s1627_s15 = smov %s1288_s17 }
 0x15e   : > { %s1628_s16 = smov %s1292_s18  ;;  %s1629_s17 = smov %s1632_s22 }
 0x15f   : > { %s1630_s18 = smov %s1636_s23  ;;  %15 = sbr.rel (!%p13_p6) target bundleno = 5 (0x5), region = 68 }
 0x166   :  { %812 = vsyncpa [#allocation3], 1 }
 0x167   :  { %814 = vsyncpa [#allocation3 + $0x1], 1 }

</bundles_post_ra>
